<compile_context>
chip_gen: v6e
topology: v6e:2x2x1
jax: 0.10.0
libtpu: 0.0.40
codegen_flags: <defaults>
</compile_context>

<pallas_src>
import jax
import jax.numpy as jnp
from jax.experimental import pallas as pl
from jax.experimental.pallas import tpu as pltpu

_NEG = -1e30   # finite "-inf": padded class lanes never win max / argmax / softmax
_LANE = 128


def _single_tile_kernel(B, Cp, inv_b):
    """Whole padded classifier resident in VMEM: one matmul + one softmax pass."""

    def kernel(x_ref, w_ref, b_ref, lab_ref, loss_ref, acc_ref):
        # (B, D) bf16 @ (D, Cp) bf16 -> f32 on the MXU.
        logits = jnp.dot(x_ref[...], w_ref[...],
                         preferred_element_type=jnp.float32) + b_ref[...]
        labels = lab_ref[...]                                     # (B, 1) i32
        ids = jax.lax.broadcasted_iota(jnp.int32, (B, Cp), 1)

        # Label logit via masked select (no one-hot temporary).
        picked = jnp.sum(jnp.where(ids == labels, logits, 0.0),
                         axis=1, keepdims=True)
        m = jnp.max(logits, axis=1, keepdims=True)
        lse = m + jnp.log(jnp.sum(jnp.exp(logits - m), axis=1, keepdims=True))
        loss_ref[...] = (jnp.sum(lse - picked) * inv_b).reshape(1, 1)

        # argmax with first-index tie-break (matches torch.max(1)[1]).
        best = jnp.min(jnp.where(logits == m, ids, Cp), axis=1, keepdims=True)
        correct = (best == labels).astype(jnp.float32)
        # TODO(synk): torch computes the accuracy mean in float64; JAX x64 is
        # disabled by default so this stays float32.
        acc_ref[...] = (jnp.sum(correct) * inv_b).reshape(1, 1)

    return kernel


def _tiled_kernel(B, TC, n_tiles, inv_b):
    """Class axis streamed in tiles: online logsumexp + per-lane running argmax."""

    def kernel(x_ref, w_ref, b_ref, lab_ref, loss_ref, acc_ref,
               m_run, l_run, picked, lane_val, lane_gid):
        c = pl.program_id(0)

        @pl.when(c == 0)
        def _init():
            m_run[...] = jnp.full((B, 1), _NEG, jnp.float32)
            l_run[...] = jnp.zeros((B, 1), jnp.float32)
            picked[...] = jnp.zeros((B, 1), jnp.float32)
            lane_val[...] = jnp.full((B, TC), _NEG, jnp.float32)
            lane_gid[...] = jnp.zeros((B, TC), jnp.int32)

        logits = jnp.dot(x_ref[...], w_ref[...],
                         preferred_element_type=jnp.float32) + b_ref[...]
        labels = lab_ref[...]                                     # (B, 1) i32
        gids = jax.lax.broadcasted_iota(jnp.int32, (B, TC), 1) + c * TC

        # Label logit (only the tile containing the label contributes).
        picked[...] += jnp.sum(jnp.where(gids == labels, logits, 0.0),
                               axis=1, keepdims=True)

        # Online logsumexp over class tiles.
        m_tile = jnp.max(logits, axis=1, keepdims=True)
        m_new = jnp.maximum(m_run[...], m_tile)
        l_run[...] = (l_run[...] * jnp.exp(m_run[...] - m_new)
                      + jnp.sum(jnp.exp(logits - m_new), axis=1, keepdims=True))
        m_run[...] = m_new

        # Per-lane running argmax: VPU compare/select only (no extra XLU lane
        # reduction per tile).  Strict ">" keeps the earlier tile so the final
        # cross-lane min-index reduction reproduces the first-index tie-break.
        take = logits > lane_val[...]
        lane_gid[...] = jnp.where(take, gids, lane_gid[...])
        lane_val[...] = jnp.where(take, logits, lane_val[...])

        @pl.when(c == n_tiles - 1)
        def _finalize():
            lse = m_run[...] + jnp.log(l_run[...])
            loss_ref[...] = (jnp.sum(lse - picked[...]) * inv_b).reshape(1, 1)
            gmax = jnp.max(lane_val[...], axis=1, keepdims=True)
            big = jnp.int32(n_tiles * TC)
            best = jnp.min(jnp.where(lane_val[...] == gmax, lane_gid[...], big),
                           axis=1, keepdims=True)
            correct = (best == labels).astype(jnp.float32)
            # TODO(synk): torch uses float64 for the accuracy mean (JAX x64 off).
            acc_ref[...] = (jnp.sum(correct) * inv_b).reshape(1, 1)

    return kernel


def speaker_criterion(cFeature, otherEncoded, label, weight, bias):
    """Pallas-backed SpeakerCriterion.forward.

    cFeature: (B, S, D); otherEncoded unused (signature parity);
    label: (B,) int; weight: (D, C) (= torch weight.T); bias: (C,).
    Returns (loss, acc), each (1, 1) float32.
    """
    del otherEncoded  # unused by the torch forward as well
    B, S, D = cFeature.shape
    C = weight.shape[1]

    # Slice the last time step FIRST, then cast only the (B, D) slab to the
    # bf16 MXU operand (no full (B, S, D) cast / copy).
    x = cFeature[:, -1, :].astype(jnp.bfloat16)
    lab2d = label.reshape(B, 1).astype(jnp.int32)

    # ---- per-generation VMEM budget (v5e/v6e 128 MiB, v7x 64 MiB physical) ----
    try:
        phys = int(getattr(pltpu.get_tpu_info(), "vmem_capacity_bytes",
                           64 * 1024 * 1024))
    except Exception:  # pragma: no cover - conservative fallback
        phys = 64 * 1024 * 1024
    budget = (phys * 3) // 4          # leave headroom below physical capacity

    c_pad = pl.cdiv(C, _LANE) * _LANE
    # Fixed cost: double-buffered bf16 x + slack for bias sublane padding,
    # labels, accumulators and the two (1,1) outputs.
    fixed = 2 * B * D * 2 + 256 * 1024
    # Single-tile cost: double-buffered bf16 weight + f32 bias row (8 sublanes).
    single_bytes = fixed + c_pad * (2 * 2 * D + 2 * 8 * 4)

    if single_bytes <= budget:
        TC, Cp, n_tiles = c_pad, c_pad, 1
    else:
        # Per class column: dbuf bf16 weight + dbuf f32 bias (8 sublanes)
        # + (B, TC) per-lane argmax scratch (f32 val + i32 id).
        per_col = 2 * 2 * D + 2 * 8 * 4 + B * 8
        tc_cap = max(_LANE, (budget - fixed) // per_col)
        TC = max(_LANE, min(c_pad, (tc_cap // _LANE) * _LANE))
        Cp = pl.cdiv(c_pad, TC) * TC
        n_tiles = Cp // TC

    # ---- pad / cast classifier params ----------------------------------------
    # Zero weight columns, -1e30 bias (kept in f32 so it stays finite).
    # TODO(synk): cache (w_p, b_p) across calls (this pad/cast re-reads the full
    # weight every call); with C a multiple of 128 only the bf16 cast remains.
    if Cp == C:
        w_p = weight.astype(jnp.bfloat16)
        b_p = bias.reshape(1, C).astype(jnp.float32)
    else:
        w_p = jnp.zeros((D, Cp), jnp.bfloat16).at[:, :C].set(
            weight.astype(jnp.bfloat16))
        b_p = jnp.full((1, Cp), _NEG, jnp.float32).at[:, :C].set(
            bias.reshape(1, C).astype(jnp.float32))

    inv_b = 1.0 / float(B)
    in_specs = [
        pl.BlockSpec((B, D), lambda c: (0, 0)),       # x_last, resident bf16
        pl.BlockSpec((D, TC), lambda c: (0, c)),      # bf16 weight tile
        pl.BlockSpec((1, TC), lambda c: (0, c)),      # f32 bias tile (-1e30 pad)
        pl.BlockSpec((B, 1), lambda c: (0, 0)),       # labels, resident
    ]
    out_specs = (pl.BlockSpec((1, 1), lambda c: (0, 0)),
                 pl.BlockSpec((1, 1), lambda c: (0, 0)))
    out_shape = (jax.ShapeDtypeStruct((1, 1), jnp.float32),
                 jax.ShapeDtypeStruct((1, 1), jnp.float32))

    if n_tiles == 1:
        kernel = _single_tile_kernel(B, Cp, inv_b)
        scratch = []
    else:
        kernel = _tiled_kernel(B, TC, n_tiles, inv_b)
        scratch = [
            pltpu.VMEM((B, 1), jnp.float32),   # m_run
            pltpu.VMEM((B, 1), jnp.float32),   # l_run
            pltpu.VMEM((B, 1), jnp.float32),   # picked label logit
            pltpu.VMEM((B, TC), jnp.float32),  # per-lane running max
            pltpu.VMEM((B, TC), jnp.int32),    # per-lane running argmax id
        ]

    # TODO(synk): v7x — for very large C, split class tiles across the two
    # TensorCores (leading size-2 "parallel" axis emitting partial softmax /
    # argmax state, merged in the wrapper).
    # TODO(synk): large B — add a "parallel" batch grid axis (block 256 on
    # v6e/v7x, 128 on v5e) so the MXU row dimension is filled.
    loss, acc = pl.pallas_call(
        kernel,
        out_shape=out_shape,
        grid=(n_tiles,),
        in_specs=in_specs,
        out_specs=out_specs,
        scratch_shapes=scratch,
        compiler_params=pltpu.CompilerParams(
            dimension_semantics=("arbitrary",),
            vmem_limit_bytes=int(budget),
        ),
    )(x, w_p, b_p, lab2d)
    return loss, acc


if __name__ == "__main__":
    # Small, module-consistent shapes: batch=2, seq=8, dimEncoder=32, nSpeakers=16
    B, S, D, C = 2, 8, 32, 16

    key = jax.random.PRNGKey(0)
    k_feat, k_other, k_lab, k_w, k_b = jax.random.split(key, 5)

    cFeature = jax.random.normal(k_feat, (B, S, D), dtype=jnp.float32)
    otherEncoded = jax.random.normal(k_other, (B, S, D), dtype=jnp.float32)
    label = jax.random.randint(k_lab, (B,), 0, C, dtype=jnp.int32)

    # Deterministic nn.Linear-style init: U(-1/sqrt(D), 1/sqrt(D))
    bound = 1.0 / (D ** 0.5)
    weight = jax.random.uniform(k_w, (D, C), jnp.float32, -bound, bound)
    bias = jax.random.uniform(k_b, (C,), jnp.float32, -bound, bound)

    loss, acc = speaker_criterion(cFeature, otherEncoded, label, weight, bias)
    jax.block_until_ready((loss, acc))

    # Pure-JAX reference (same bf16 MXU operands, f32 accumulation).
    x_last = cFeature[:, -1, :]
    logits = jnp.dot(x_last.astype(jnp.bfloat16), weight.astype(jnp.bfloat16),
                     preferred_element_type=jnp.float32) + bias
    ref_loss = jnp.mean(
        jax.nn.logsumexp(logits, axis=1)
        - jnp.take_along_axis(logits, label[:, None], axis=1)[:, 0]
    ).reshape(1, 1)
    ref_acc = jnp.mean(
        (jnp.argmax(logits, axis=1) == label).astype(jnp.float32)).reshape(1, 1)

    assert jnp.allclose(loss, ref_loss, atol=1e-4, rtol=1e-4), (loss, ref_loss)
    assert jnp.allclose(acc, ref_acc, atol=1e-6), (acc, ref_acc)

    print("KERNEL_OK")
</pallas_src>

<mosaic_0001>
module attributes {stable_mosaic.version = 11 : i64} {
  func.func @kernel(%arg0: i32, %arg1: memref<2x32xbf16, #tpu.memory_space<vmem>>, %arg2: memref<32x128xbf16, #tpu.memory_space<vmem>>, %arg3: memref<1x128xf32, #tpu.memory_space<vmem>>, %arg4: memref<2x1xi32, #tpu.memory_space<vmem>>, %arg5: memref<1x1xf32, #tpu.memory_space<vmem>>, %arg6: memref<1x1xf32, #tpu.memory_space<vmem>>) attributes {dimension_semantics = [#tpu.dimension_semantics<arbitrary>], iteration_bounds = array<i64: 1>, scalar_prefetch = 0 : i64, scratch_operands = 0 : i64, tpu.core_type = #tpu.core_type<tc>, window_params = [{pipeline_mode = #tpu.pipeline_mode<synchronous>, transform_indices = @transform_0, window_bounds = array<i64: 2, 32>}, {transform_indices = @transform_1, window_bounds = array<i64: 32, 128>}, {transform_indices = @transform_2, window_bounds = array<i64: 1, 128>}, {pipeline_mode = #tpu.pipeline_mode<synchronous>, transform_indices = @transform_3, window_bounds = array<i64: 2, 1>}, {pipeline_mode = #tpu.pipeline_mode<synchronous>, transform_indices = @transform_4, window_bounds = array<i64: 1, 1>}, {pipeline_mode = #tpu.pipeline_mode<synchronous>, transform_indices = @transform_5, window_bounds = array<i64: 1, 1>}]} {
    %c0 = arith.constant 0 : index
    %c0_0 = arith.constant 0 : index
    %0 = vector.load %arg1[%c0, %c0_0] : memref<2x32xbf16, #tpu.memory_space<vmem>>, vector<2x32xbf16>
    %c0_1 = arith.constant 0 : index
    %c0_2 = arith.constant 0 : index
    %1 = vector.load %arg2[%c0_1, %c0_2] : memref<32x128xbf16, #tpu.memory_space<vmem>>, vector<32x128xbf16>
    %cst = arith.constant dense<0.000000e+00> : vector<2x128xf32>
    %2 = tpu.matmul %0, %1, %cst {dimension_numbers = #tpu.dot_dimension_numbers<[1], [0], [0], [1], [0, 0, 1, 1], [], []>} : vector<2x32xbf16>, vector<32x128xbf16>, vector<2x128xf32> -> vector<2x128xf32>
    %c0_3 = arith.constant 0 : index
    %c0_4 = arith.constant 0 : index
    %3 = vector.load %arg3[%c0_3, %c0_4] : memref<1x128xf32, #tpu.memory_space<vmem>>, vector<1x128xf32>
    %4 = vector.broadcast %3 : vector<1x128xf32> to vector<2x128xf32>
    %5 = arith.addf %2, %4 : vector<2x128xf32>
    %c0_5 = arith.constant 0 : index
    %c0_6 = arith.constant 0 : index
    %6 = vector.load %arg4[%c0_5, %c0_6] : memref<2x1xi32, #tpu.memory_space<vmem>>, vector<2x1xi32>
    %7 = tpu.iota {dimensions = array<i32: 1>} : vector<2x128xi32>
    %8 = vector.broadcast %6 : vector<2x1xi32> to vector<2x128xi32>
    %9 = arith.cmpi eq, %7, %8 : vector<2x128xi32>
    %cst_7 = arith.constant 0.000000e+00 : f32
    %10 = vector.broadcast %cst_7 : f32 to vector<2x128xf32>
    %11 = arith.select %9, %5, %10 : vector<2x128xi1>, vector<2x128xf32>
    %cst_8 = arith.constant dense<0.000000e+00> : vector<2xf32>
    %12 = vector.multi_reduction <add>, %11, %cst_8 [1] : vector<2x128xf32> to vector<2xf32>
    %13 = vector.shape_cast %12 : vector<2xf32> to vector<2x1xf32>
    %cst_9 = arith.constant dense<0xFF800000> : vector<2xf32>
    %14 = vector.multi_reduction <maximumf>, %5, %cst_9 [1] : vector<2x128xf32> to vector<2xf32>
    %15 = vector.shape_cast %14 : vector<2xf32> to vector<2x1xf32>
    %16 = vector.broadcast %15 : vector<2x1xf32> to vector<2x128xf32>
    %17 = arith.subf %5, %16 : vector<2x128xf32>
    %18 = math.exp %17 : vector<2x128xf32>
    %cst_10 = arith.constant dense<0.000000e+00> : vector<2xf32>
    %19 = vector.multi_reduction <add>, %18, %cst_10 [1] : vector<2x128xf32> to vector<2xf32>
    %20 = vector.shape_cast %19 : vector<2xf32> to vector<2x1xf32>
    %21 = math.log %20 : vector<2x1xf32>
    %22 = arith.addf %15, %21 : vector<2x1xf32>
    %23 = arith.subf %22, %13 : vector<2x1xf32>
    %24 = vector.shape_cast %23 : vector<2x1xf32> to vector<1x2x1xf32>
    %cst_11 = arith.constant dense<0.000000e+00> : vector<1xf32>
    %25 = vector.multi_reduction <add>, %24, %cst_11 [1, 2] : vector<1x2x1xf32> to vector<1xf32>
    %26 = vector.shape_cast %25 : vector<1xf32> to vector<1x1x1xf32>
    %27 = vector.extract %26[0, 0, 0] : f32 from vector<1x1x1xf32>
    %cst_12 = arith.constant 5.000000e-01 : f32
    %28 = arith.mulf %27, %cst_12 : f32
    %29 = vector.broadcast %28 : f32 to vector<1x1xf32>
    %c0_13 = arith.constant 0 : index
    %c0_14 = arith.constant 0 : index
    %30 = vector.load %arg5[%c0_13, %c0_14] : memref<1x1xf32, #tpu.memory_space<vmem>>, vector<1x1xf32>
    tpu.vector_store %arg5[%c0_13, %c0_14], %29 {strides = array<i32>} : memref<1x1xf32, #tpu.memory_space<vmem>>, vector<1x1xf32>,
    %31 = vector.broadcast %15 : vector<2x1xf32> to vector<2x128xf32>
    %32 = arith.cmpf oeq, %5, %31 : vector<2x128xf32>
    %c128_i32 = arith.constant 128 : i32
    %33 = vector.broadcast %c128_i32 : i32 to vector<2x128xi32>
    %34 = arith.select %32, %7, %33 : vector<2x128xi1>, vector<2x128xi32>
    %cst_15 = arith.constant dense<2147483647> : vector<2xi32>
    %35 = vector.multi_reduction <minsi>, %34, %cst_15 [1] : vector<2x128xi32> to vector<2xi32>
    %36 = vector.shape_cast %35 : vector<2xi32> to vector<2x1xi32>
    %37 = arith.cmpi eq, %36, %6 : vector<2x1xi32>
    %38 = arith.extui %37 : vector<2x1xi1> to vector<2x1xi32>
    %39 = arith.sitofp %38 : vector<2x1xi32> to vector<2x1xf32>
    %40 = vector.shape_cast %39 : vector<2x1xf32> to vector<1x2x1xf32>
    %cst_16 = arith.constant dense<0.000000e+00> : vector<1xf32>
    %41 = vector.multi_reduction <add>, %40, %cst_16 [1, 2] : vector<1x2x1xf32> to vector<1xf32>
    %42 = vector.shape_cast %41 : vector<1xf32> to vector<1x1x1xf32>
    %43 = vector.extract %42[0, 0, 0] : f32 from vector<1x1x1xf32>
    %cst_17 = arith.constant 5.000000e-01 : f32
    %44 = arith.mulf %43, %cst_17 : f32
    %45 = vector.broadcast %44 : f32 to vector<1x1xf32>
    %c0_18 = arith.constant 0 : index
    %c0_19 = arith.constant 0 : index
    %46 = vector.load %arg6[%c0_18, %c0_19] : memref<1x1xf32, #tpu.memory_space<vmem>>, vector<1x1xf32>
    tpu.vector_store %arg6[%c0_18, %c0_19], %45 {strides = array<i32>} : memref<1x1xf32, #tpu.memory_space<vmem>>, vector<1x1xf32>,
    return
  }
  func.func @transform_0(%arg0: i32) -> (i32, i32) {
    %c0_i32 = arith.constant 0 : i32
    %c0_i32_0 = arith.constant 0 : i32
    %c0_i32_1 = arith.constant 0 : i32
    return %c0_i32, %c0_i32_0 : i32, i32
  }
  func.func @transform_1(%arg0: i32) -> (i32, i32) {
    %c0_i32 = arith.constant 0 : i32
    %c0_i32_0 = arith.constant 0 : i32
    return %c0_i32, %arg0 : i32, i32
  }
  func.func @transform_2(%arg0: i32) -> (i32, i32) {
    %c0_i32 = arith.constant 0 : i32
    %c0_i32_0 = arith.constant 0 : i32
    return %c0_i32, %arg0 : i32, i32
  }
  func.func @transform_3(%arg0: i32) -> (i32, i32) {
    %c0_i32 = arith.constant 0 : i32
    %c0_i32_0 = arith.constant 0 : i32
    %c0_i32_1 = arith.constant 0 : i32
    return %c0_i32, %c0_i32_0 : i32, i32
  }
  func.func @transform_4(%arg0: i32) -> (i32, i32) {
    %c0_i32 = arith.constant 0 : i32
    %c0_i32_0 = arith.constant 0 : i32
    %c0_i32_1 = arith.constant 0 : i32
    return %c0_i32, %c0_i32_0 : i32, i32
  }
  func.func @transform_5(%arg0: i32) -> (i32, i32) {
    %c0_i32 = arith.constant 0 : i32
    %c0_i32_0 = arith.constant 0 : i32
    %c0_i32_1 = arith.constant 0 : i32
    return %c0_i32, %c0_i32_0 : i32, i32
  }
}

</mosaic_0001>

<bundles_post_ra>
// kernel: tpu_custom_call.1
= control target key start
LH: loop header
LB: loop body
LE: loop exit
PB: predicated region body
PF: predicated region fallthrough
CT: control target
= control target key end

     0   :  { %11 = vsyncpa [#allocation3], 0  ;;  %s374_s0 = inlined_call_operand.vmem [shape: bf16[2,32], index: 0, kind: input, shape index: {}]   ;;  %s375_s1 = inlined_call_operand.hbm [shape: bf16[32,128], index: 1, kind: input, shape index: {}]   ;;  %s376_s2 = inlined_call_operand.vmem [shape: f32[1,128], index: 2, kind: input, shape index: {}]   ;;  %s377_s3 = inlined_call_operand.vmem [shape: s32[2,1], index: 3, kind: input, shape index: {}]   ;;  %s378_s4 = inlined_call_operand.hbm [shape: f32[1,1], index: 4, kind: output, shape index: {0}]   ;;  %s379_s5 = inlined_call_operand.hbm [shape: f32[1,1], index: 5, kind: output, shape index: {1}]  }
   0x1   :  { %12 = vsyncpa [#allocation4], 0 }
   0x2   :  { %13 = vsyncpa [#allocation7], 0  ;;  %s308_s18 = smov [#allocation2]  }
   0x3   :  { %s21_s19 = sshll.u32 %s308_s18, 4  ;;  %s22_s19 = int_to_ptr.vmem [resolvable:$true] %s21_s19 }
   0x4   :  { %s250_s20 = scalar_lea.vmem %s22_s19, 256  ;;  %p255_p1 = scmp.lt.s32.totalorder %s22_s19, %s22_s19 }
   0x5   :  { %p251_p0 = scmp.ne.s32.totalorder %s22_s19, %s250_s20  ;;  %p256_p2 = scmp.lt.s32.totalorder %s250_s20, %s250_s20 }
   0x7   :  { %p257_p3 = por %p256_p2, %p255_p1 }
   0x9   :  { %p258_p4 = pnand %p257_p3, %p251_p0 }
   0xb   :  { %261 = shalt.err (!%p258_p4)
}
   0xc   :  { %s309_s21 = smov 64   ;;  %s310_s22 = smov 4  }
   0xd   :  { %27 = dma.hbm_to_vmem [thread:$0]  %s375_s1, 256, %s22_s19, [#allocation3], %s309_s21, %s309_s21, %s310_s22  }
   0xe   :  { %302 = dma.done.wait [#allocation3], 256  }
   0xf   :  { %303 = vsyncadd [#allocation3], 4294967040  ;;  %v311_v0 = vmov 0.0   ;;  %vm312_vm0 = vmmov 0   ;;  %v313_v1 = vmov 0   ;;  %v236_v2 = vld [vmem:[#allocation2 + $0x8] sm:$0xff]   ;;  %v105_v13 = vlaneseq }
  0x10   :  { %214 = vmatprep.subr.bf16.mxu0 %v311_v0  ;;  %218 = vmatprep.mubr.msk.bf16.mxu0 %vm312_vm0, %v311_v0  ;;  %v237_v3 = vld [vmem:[#allocation2] sm:$0xff]   ;;  %vm60_vm1 = vcmask 261120   ;;  %vm112_vm2 = vcmask 1041408   ;;  %vm129_vm6 = vcmask 1024   ;;  %vm142_vm8 = vcmask 0   ;;  %s315_s6 = smov [#allocation6]  }
  0x11   :  { %234 = vset.pattern.permute.xlu1 %v313_v1  ;;  %235 = vset.pattern.permute.xlu0 %v313_v1  ;;  %v104_v4 = vld [vmem:[%s377_s3] sm:$0x3]  ;;  %v106_v14 = vand.u32 127, %v105_v13  ;;  %s193_s7 = sshll.u32 %s315_s6, 4  ;;  %s194_s7 = int_to_ptr.vmem [resolvable:$true] %s193_s7 }
  0x12   :  { %215 = vmatpush3.bf16.msra.mxu0 %v236_v2  ;;  %108 = vperm.xlu1 %234, %v104_v4   ;;  %v36_v5 = vld [vmem:[%s374_s0] sm:$0x1] }
  0x13   :  { %216 = vmatprep.subr.bf16.mxu0 %v311_v0  ;;  %v206_v6 = vld [vmem:[%s376_s2] ss:$0 sm:$0xff]  ;;  %s314_s2 = smov [#allocation5]  }
  0x14   :  { %s183_s3 = sshll.u32 %s314_s2, 4  ;;  %s184_s3 = int_to_ptr.vmem [resolvable:$true] %s183_s3 }
  0x15   :  { %s262_s10 = scalar_lea.vmem %s184_s3, 16  ;;  %s266_s11 = scalar_lea.vmem %s184_s3, 32 }
  0x16   :  { %217 = vmatpush3.bf16.msra.mxu0 %v237_v3  ;;  %p263_p5 = scmp.ne.s32.totalorder %s184_s3, %s262_s10  ;;  %p267_p6 = scmp.lt.s32.totalorder %s184_s3, %s184_s3 }
  0x17   :  { %p268_p7 = scmp.lt.s32.totalorder %s266_s11, %s262_s10 }
  0x19   :  { %219 = vmatmul.mubr.msk.bf16.vlgmr.msra.gmra.mxu0 %vm60_vm1, %v36_v5  ;;  %p269_p8 = por %p268_p7, %p267_p6 }
  0x1b   :  { %p270_p9 = pnand %p269_p8, %p263_p5 }
  0x8d   :  { %v109_v25 = vpop.permute.xlu1 %108 }
  0x8e   :  { %vm110_vm4 = vcmp.eq.s32.totalorder %v106_v14, %v109_v25 }
  0xd9   :  { %v98_v7 = vpop.f32.mrf.mxu0 }
  0xda   :  { %v99_v8 = vadd.f32 %v206_v6, %v98_v7 }
  0xdb   :  { %v220_v9 = vpop.f32.mrf.mxu0 }
  0xdc   :  { %v116_v10 = vsel %vm112_vm2, %v99_v8, -inf  ;;  %v111_v29 = vsel %vm110_vm4, %v99_v8, 0.0 }
  0xdd   :  { %117 = vmax.xlane.f32.xlu0 %v116_v10  ;;  %v101_v11 = vpop.f32.mrf.mxu0  ;;  %v113_v30 = vsel %vm112_vm2, %v111_v29, 0.0 }
  0xdf   :  { %v221_v12 = vpop.f32.mrf.mxu0 }
 0x166   :  { %v118_v15 = vpop.xlane.xlu0 %117 }
 0x167   :  { %v119_v16 = vsub.f32 %v99_v8, %v118_v15  ;;  %vm144_vm3 = vcmp.eq.f32.partialorder %v99_v8, %v118_v15 }
 0x168   :  { %v145_v17 = vsel %vm144_vm3, %v106_v14, 128 }
 0x169   :  { %v120_v18 = vmul.f32 1.442695, %v119_v16  ;;  %v146_v19 = vsel %vm112_vm2, %v145_v17, 2147483647 }
 0x16a   :  { %v148_v20 = vshra.s32 %v146_v19, 16  ;;  %v147_v24 = vand.u32 65535, %v146_v19 }
 0x16b   :  { %238 = vpow2.f32 %v120_v18 }
 0x16c   :  { %v150_v21 = vcvt.s32.f32 %v148_v20  ;;  %v149_v27 = vcvt.s32.f32 %v147_v24 }
 0x16e   :  { %151 = vmin.xlane.f32.xlu0 %v150_v21 }
 0x178   :  { %v239_v22 = vpop.eup %238 }
 0x179   :  { %v122_v23 = vsel %vm112_vm2, %v239_v22, 0.0 }
 0x17a   :  { %123 = vadd.xlane.f32.xlu1 %v122_v23 }
 0x1f7   :  { %v152_v26 = vpop.xlane.xlu0 %151 }
 0x1f8   :  { %vm153_vm5 = vcmp.eq.f32.partialorder %v150_v21, %v152_v26  ;;  %v158_v33 = vcvt.f32.s32 %v152_v26 }
 0x1f9   :  { %v154_v28 = vsel %vm153_vm5, %v149_v27, inf }
 0x1fa   :  { %155 = vmin.xlane.f32.xlu0 %v154_v28  ;;  %v159_v36 = vshll.u32 %v158_v33, 16 }
 0x1fe   :  { %114 = vadd.xlane.f32.xlu0 %v113_v30 }
 0x203   :  { %v124_v31 = vpop.xlane.xlu1 %123 }
 0x204   :  { %240 = vlog2.f32 %v124_v31 }
 0x211   :  { %v241_v32 = vpop.eup %240 }
 0x212   :  { %v126_v34 = vmul.f32 0.6931472, %v241_v32 }
 0x214   :  { %v127_v39 = vadd.f32 %v126_v34, %v118_v15 }
 0x283   :  { %v156_v35 = vpop.xlane.xlu0 %155 }
 0x284   :  { %v157_v37 = vcvt.f32.s32 %v156_v35 }
 0x286   :  { %v160_v38 = vadd.s32 %v159_v36, %v157_v37 }
 0x287   :  { %v115_v40 = vpop.xlane.xlu0 %114 }
 0x288   :  { %v128_v41 = vsub.f32 %v127_v39, %v115_v40  ;;  %vm161_vm7 = vcmp.eq.s32.totalorder %v160_v38, %v104_v4 }
 0x289   :  { %v210_v43 = vsel %vm161_vm7, 1.0, %v311_v0 }
 0x28a   :  { %v130_v42 = vsel %vm129_vm6, %v128_v41, 0.0  ;;  %v164_v44 = vsel %vm129_vm6, %v210_v43, 0.0 }
 0x28b   :  { %131 = vadd.xlane.f32.xlu0 %v130_v42 }
 0x28f   :  { %165 = vadd.xlane.f32.xlu0 %v164_v44 }
 0x314   :  { %v132_v45 = vpop.xlane.xlu0 %131 }
 0x315   :  { %v133_v46 = vrot.slane %v132_v45, 4 }
 0x317   :  { %v134_v47 = vadd.f32 %v133_v46, %v132_v45 }
 0x318   :  { %v166_v48 = vpop.xlane.xlu0 %165 }
 0x319   :  { %v135_v49 = vrot.slane %v134_v47, 2  ;;  %v167_v50 = vrot.slane %v166_v48, 4 }
 0x31b   :  { %v168_v51 = vadd.f32 %v167_v50, %v166_v48  ;;  %v136_v52 = vadd.f32 %v135_v49, %v134_v47 }
 0x31d   :  { %v169_v53 = vrot.slane %v168_v51, 2  ;;  %v137_v54 = vrot.slane %v136_v52, 1 }
 0x31f   :  { %v170_v55 = vadd.f32 %v169_v53, %v168_v51  ;;  %v138_v56 = vadd.f32 %v137_v54, %v136_v52 }
 0x321   :  { %222 = vpush %v138_v56  ;;  %v171_v57 = vrot.slane %v170_v55, 1 }
 0x323   :  { %v172_v58 = vadd.f32 %v171_v57, %v170_v55 }
 0x325   :  { %224 = vpush %v172_v58 }
 0x352   :  { %s223_s0 = spop %222 }
 0x353   :  { %s140_s30 = smul.f32 0.5, %s223_s0 }
 0x355   :  { %v141_v59 = vstv %s140_s30 }
 0x356   :  { %s225_s8 = spop %224  ;;  %143 = vst.msk [vmem:[#allocation5] sm:$0x1] %vm142_vm8, %v141_v59 }
 0x357   :  { %s174_s9 = smul.f32 0.5, %s225_s8 }
 0x358   :  { %273 = shalt.err (!%p270_p9)
}
 0x359   :  { %186 = dma.vmem_to_hbm [thread:$0]  %s184_s3, 16, %s378_s4, [#allocation4]   ;;  %v175_v60 = vstv %s174_s9 }
 0x35a   :  { %176 = vst.msk [vmem:[#allocation6] sm:$0x1] %vm142_vm8, %v175_v60  ;;  %s282_s14 = scalar_lea.vmem %s194_s7, 16  ;;  %s286_s15 = scalar_lea.vmem %s194_s7, 32 }
 0x35b   :  { %p283_p10 = scmp.ne.s32.totalorder %s194_s7, %s282_s14  ;;  %p287_p11 = scmp.lt.s32.totalorder %s194_s7, %s194_s7 }
 0x35c   :  { %p288_p12 = scmp.lt.s32.totalorder %s286_s15, %s282_s14 }
 0x35e   :  { %p289_p13 = por %p288_p12, %p287_p11 }
 0x360   :  { %p290_p0 = pnand %p289_p13, %p283_p10 }
 0x362   :  { %293 = shalt.err (!%p290_p0)
}
 0x363   :  { %196 = dma.vmem_to_hbm [thread:$0]  %s194_s7, 16, %s379_s5, [#allocation7]  }
 0x364   :  { %304 = dma.done.wait [#allocation4], 16  }
 0x365   :  { %305 = vsyncadd [#allocation4], 4294967280 }
 0x366   :  { %306 = dma.done.wait [#allocation7], 16  }
 0x367   :  { %307 = vsyncadd [#allocation7], 4294967280 }
 0x368   :  { %203 = vsyncpa [#allocation3], 1 }
 0x369   :  { %204 = vsyncpa [#allocation4], 1 }
 0x36a   :  { %205 = vsyncpa [#allocation7], 1 }

</bundles_post_ra>
